<compile_context>
chip_gen: v5e
topology: v5e:2x2
jax: 0.10.0
libtpu: 0.0.40
codegen_flags: <defaults>
</compile_context>

<pallas_src>
import jax
import jax.numpy as jnp
from jax.experimental import pallas as pl
from jax.experimental.pallas import tpu as pltpu

EPS = 1e-5          # nn.InstanceNorm2d default eps
NEG_SLOPE = 0.2     # leaky_relu slope in actvn


def _ceil_to(v, m):
    return -(-v // m) * m


# ---------------------------------------------------------------------------
# fused kernel: one grid step processes b_tile images laid side-by-side on
# the 128-lane axis; every tensor in the kernel is a lane-dense (C, b*HW) tile
# ---------------------------------------------------------------------------
def _make_kernel(H, W, b_tile, has_skip, compute_dtype):
    HW = H * W
    BHW = b_tile * HW
    taps = [(dh, dw) for dh in (-1, 0, 1) for dw in (-1, 0, 1)]
    use_mxu_stats = b_tile > 1

    def kernel(*refs):
        it = iter(refs)
        x_ref = next(it)            # (1, cin_p, BHW)  f32
        seg_ref = next(it)          # (1, 1, BHW)      i32
        mask_ref = next(it)         # (9, 1, BHW)      f32  per-tap validity
        if use_mxu_stats:
            sum_ref = next(it)      # (BHW, bt_p)      f32  per-image mean mat
            bc_ref = next(it)       # (bt_p, BHW)      f32  per-image bcast
        g0_ref = next(it); be0_ref = next(it)    # (2, cin_p, 1)  f32
        g1_ref = next(it); be1_ref = next(it)    # (2, cmid_p, 1) f32
        w0_ref = next(it)           # (cmid_p, 9*cin_p)            compute_dtype
        w1_ref = next(it)           # (cout_p, 9*cmid_p [+cin_p])  compute_dtype
        b1_ref = next(it)           # (cout_p, 1)      f32
        out_ref = next(it)          # (1, cout_p, BHW) f32

        x = x_ref[0]                              # (cin_p, BHW) f32
        sel0 = seg_ref[0] == 0                    # (1, BHW) bool
        masks = mask_ref[...]                     # (9, 1, BHW) f32
        w0 = w0_ref[...]
        w1 = w1_ref[...]
        b1 = b1_ref[...]
        g0_t, be0_t = g0_ref[...], be0_ref[...]
        g1_t, be1_t = g1_ref[...], be1_ref[...]
        if use_mxu_stats:
            sum_mat = sum_ref[...]
            bc_mat = bc_ref[...]

        def norm_act(v, g_tbl, b_tbl):
            # InstanceNorm (no affine, one-pass stats) -> per-pixel gamma/beta
            # lookup on the binary segmap -> leaky_relu(0.2).  Stats in f32.
            # Note: one-pass E[x^2]-m^2 can cancel for inputs with a large
            # per-channel DC offset; fine for activation-scale data.
            c = v.shape[0]
            if use_mxu_stats:
                # Per-image segment means on the MXU (keeps the XLU free for
                # the im2col rolls below).
                m = jnp.dot(v, sum_mat, preferred_element_type=jnp.float32)
                ms = jnp.dot(v * v, sum_mat, preferred_element_type=jnp.float32)
                var = jnp.maximum(ms - m * m, 0.0)
                inv = jax.lax.rsqrt(var + EPS)
                sb = jnp.dot(jnp.concatenate([inv, -m * inv], axis=0), bc_mat,
                             preferred_element_type=jnp.float32)  # (2c, BHW)
                scale, shift = sb[:c], sb[c:]
            else:
                m = jnp.mean(v, axis=1, keepdims=True)
                ms = jnp.mean(v * v, axis=1, keepdims=True)
                var = jnp.maximum(ms - m * m, 0.0)
                scale = jax.lax.rsqrt(var + EPS)
                shift = -m * scale
            n = v * scale + shift
            g = jnp.where(sel0, g_tbl[0], g_tbl[1])               # (c, BHW)
            b = jnp.where(sel0, b_tbl[0], b_tbl[1])
            y = n * g + b
            return jnp.where(y > 0, y, NEG_SLOPE * y)

        def conv3x3(act, w2d, extra):
            # im2col via 9 lane-rolls + boundary-mask multiplies.  Pieces are
            # cast to the compute dtype before the concatenate so the patch
            # copy / live range is half-width in the bf16 path.  Rolling the
            # full b_tile*HW row is safe: cross-image values land on masked
            # (zeroed) positions only.
            pieces = []
            for k, (dh, dw) in enumerate(taps):
                s = dh * W + dw
                if s == 0:
                    pieces.append(act.astype(compute_dtype))
                else:
                    sh = pltpu.roll(act, shift=(-s) % BHW, axis=1)
                    pieces.append((sh * masks[k]).astype(compute_dtype))
            if extra is not None:
                pieces.append(extra)
            patch = jnp.concatenate(pieces, axis=0)
            return jnp.dot(w2d, patch, preferred_element_type=jnp.float32)

        h = norm_act(x, g0_t, be0_t)
        # conv0's bias is dropped: it is exactly cancelled by the InstanceNorm
        # of norm_1 (per-channel spatial mean/var are shift-invariant).
        d = conv3x3(h, w0, None)
        h = norm_act(d, g1_t, be1_t)
        if has_skip:
            # conv1 + 1x1 skip fused into one MXU matmul accumulation.
            d = conv3x3(h, w1, x.astype(compute_dtype))
            out = d + b1
        else:
            d = conv3x3(h, w1, None)
            out = x + d + b1
        out_ref[0] = out.astype(out_ref.dtype)

    return kernel


# ---------------------------------------------------------------------------
# wrapper: takes PyTorch-shaped (NCHW / OIHW) inputs and parameters
# ---------------------------------------------------------------------------
def _full_spec(a):
    shape = tuple(a.shape)
    nd = len(shape)
    return pl.BlockSpec(shape, lambda n, _nd=nd: (0,) * _nd)


def edade_resnet_block(x, segmap, params, *, compute_dtype=jnp.bfloat16,
                       b_tile=None):
    """Fused EDADEResnetBlock forward.

    x:      (N, fin, H, W) float32   (NCHW, as in the PyTorch module)
    segmap: (N, 1, H, W)   int/bool  (binary edge map, values in {0, 1})
    params (PyTorch layouts):
        conv0_w (fmid, fin, 3, 3), conv0_b (fmid,)   [conv0_b is cancelled by
        conv1_w (fout, fmid, 3, 3), conv1_b (fout,)   the following InstanceNorm]
        gamma0/beta0 (2, fin), gamma1/beta1 (2, fmid)
        skip_w (fout, fin, 1, 1) or None
    """
    N, cin, H, W = x.shape
    HW = H * W
    assert HW % 128 == 0, "kernel assumes a lane-dense H*W axis"
    cmid = params["conv0_w"].shape[0]
    cout = params["conv1_w"].shape[0]
    skip_w = params.get("skip_w", None)
    has_skip = skip_w is not None

    # Pad channel dims to a full sublane tile of the compute dtype so every
    # concat boundary / slice stays tile-aligned (8 rows for f32, 16 for bf16).
    align = 8 * 4 // jnp.dtype(compute_dtype).itemsize
    cin_p, cmid_p, cout_p = (_ceil_to(c, align) for c in (cin, cmid, cout))

    if b_tile is None:
        auto = next(bt for bt in (8, 4, 2, 1) if N % bt == 0)
        b_tile = max(1, min(auto, N // 2))   # keep grid >= 2 (v7x megacore)
    assert N % b_tile == 0
    G = N // b_tile
    BHW = b_tile * HW
    bt_p = _ceil_to(b_tile, 8)               # padded stats axis (zero-filled)

    taps = [(dh, dw) for dh in (-1, 0, 1) for dw in (-1, 0, 1)]

    def pad2(a, r, c):
        return jnp.pad(a, ((0, r - a.shape[0]), (0, c - a.shape[1])))

    def conv_w(w, co_p, ci_p):
        co, ci = w.shape[0], w.shape[1]
        w = jnp.pad(w, ((0, co_p - co), (0, ci_p - ci), (0, 0), (0, 0)))
        # kernel layout: (Cout, 9*Cin), column index = (kh*3 + kw)*Cin + cin
        return w.reshape(co_p, ci_p, 9).transpose(0, 2, 1).reshape(co_p, 9 * ci_p)

    # ---- parameters (constant block index -> fetched once by the grid) ----
    w0 = conv_w(params["conv0_w"], cmid_p, cin_p).astype(compute_dtype)
    w1 = conv_w(params["conv1_w"], cout_p, cmid_p)
    if has_skip:
        ws = pad2(skip_w.reshape(cout, cin), cout_p, cin_p)
        w1 = jnp.concatenate([w1, ws], axis=1)       # fused conv1 + 1x1 skip
    w1 = w1.astype(compute_dtype)
    b1 = jnp.pad(params["conv1_b"], (0, cout_p - cout)).reshape(cout_p, 1)
    g0 = pad2(params["gamma0"], 2, cin_p)[:, :, None]      # (2, cin_p, 1)
    be0 = pad2(params["beta0"], 2, cin_p)[:, :, None]
    g1 = pad2(params["gamma1"], 2, cmid_p)[:, :, None]
    be1 = pad2(params["beta1"], 2, cmid_p)[:, :, None]

    # Per-tap in-bounds masks, tiled per image across the b_tile*HW lane axis.
    pos = jnp.arange(HW, dtype=jnp.int32)
    hh, ww = pos // W, pos % W
    mask_rows = []
    for dh, dw in taps:
        v = ((hh + dh >= 0) & (hh + dh < H) & (ww + dw >= 0) & (ww + dw < W))
        mask_rows.append(jnp.tile(v, b_tile))
    masks = jnp.stack(mask_rows).astype(jnp.float32).reshape(9, 1, BHW)

    # ---- activations: lay b_tile images side-by-side on the lane axis -----
    def to_lane_batched(a, c, c_p, dtype):
        a = a.reshape(N, c, HW).astype(dtype)
        a = jnp.pad(a, ((0, 0), (0, c_p - c), (0, 0)))
        return a.reshape(G, b_tile, c_p, HW).transpose(0, 2, 1, 3).reshape(
            G, c_p, BHW)

    x_in = to_lane_batched(x, cin, cin_p, jnp.float32)
    seg_in = to_lane_batched(segmap, 1, 1, jnp.int32)

    ins = [x_in, seg_in, masks]
    in_specs = [
        pl.BlockSpec((1, cin_p, BHW), lambda n: (n, 0, 0)),
        pl.BlockSpec((1, 1, BHW), lambda n: (n, 0, 0)),
        _full_spec(masks),
    ]
    if b_tile > 1:
        # Per-image segment-mean / broadcast matrices for the MXU stats path.
        eye = jnp.eye(b_tile, bt_p, dtype=jnp.float32)      # (b_tile, bt_p)
        sum_mat = jnp.repeat(eye, HW, axis=0) / float(HW)   # (BHW, bt_p)
        bc_mat = jnp.repeat(eye.T, HW, axis=1)              # (bt_p, BHW)
        ins += [sum_mat, bc_mat]
        in_specs += [_full_spec(sum_mat), _full_spec(bc_mat)]
    ins += [g0, be0, g1, be1, w0, w1, b1]
    in_specs += [_full_spec(a) for a in (g0, be0, g1, be1, w0, w1, b1)]

    kernel = _make_kernel(H, W, b_tile, has_skip, compute_dtype)
    out = pl.pallas_call(
        kernel,
        out_shape=jax.ShapeDtypeStruct((G, cout_p, BHW), jnp.float32),
        grid=(G,),
        in_specs=in_specs,
        out_specs=pl.BlockSpec((1, cout_p, BHW), lambda n: (n, 0, 0)),
        compiler_params=pltpu.CompilerParams(
            dimension_semantics=("parallel",),
            # v5e's default scoped VMEM is only 16 MiB; be explicit.  32 MiB
            # is safe on all generations (half of v7x's 64 MiB physical).
            vmem_limit_bytes=32 * 1024 * 1024),
    )(*ins)

    out = out.reshape(G, cout_p, b_tile, HW).transpose(0, 2, 1, 3)
    return out.reshape(N, cout_p, H, W)[:, :cout]


# ---------------------------------------------------------------------------
# pure-JAX reference (NCHW, PyTorch semantics) for correctness checks
# ---------------------------------------------------------------------------
def _ref_forward(x, segmap, params, matmul_dtype=jnp.float32):
    def edade(xx, seg, gamma, beta):
        mean = xx.mean(axis=(2, 3), keepdims=True)
        var = ((xx - mean) ** 2).mean(axis=(2, 3), keepdims=True)
        normed = (xx - mean) / jnp.sqrt(var + EPS)
        mask = seg[:, 0].astype(jnp.int32)                     # (N, H, W)
        g = jnp.transpose(gamma[mask], (0, 3, 1, 2))           # (N, C, H, W)
        b = jnp.transpose(beta[mask], (0, 3, 1, 2))
        return normed * g + b

    def conv(xx, w, bias=None):
        y = jax.lax.conv_general_dilated(
            xx.astype(matmul_dtype), w.astype(matmul_dtype), (1, 1), "SAME",
            dimension_numbers=("NCHW", "OIHW", "NCHW"),
            preferred_element_type=jnp.float32)
        if bias is not None:
            y = y + bias[None, :, None, None]
        return y

    lrelu = lambda v: jnp.where(v > 0, v, NEG_SLOPE * v)
    skip_w = params.get("skip_w", None)
    x_s = conv(x, skip_w) if skip_w is not None else x
    dx = conv(lrelu(edade(x, segmap, params["gamma0"], params["beta0"])),
              params["conv0_w"], params["conv0_b"])
    dx = conv(lrelu(edade(dx, segmap, params["gamma1"], params["beta1"])),
              params["conv1_w"], params["conv1_b"])
    return x_s + dx


# ---------------------------------------------------------------------------
# test driver
# ---------------------------------------------------------------------------
def _make_params(key, fin, fout):
    fmid = min(fin, fout)
    ks = jax.random.split(key, 9)
    return {
        # EDADE init is ones/zeros; perturb so the embedding path is exercised.
        "gamma0": 1.0 + 0.1 * jax.random.normal(ks[0], (2, fin), jnp.float32),
        "beta0": 0.1 * jax.random.normal(ks[1], (2, fin), jnp.float32),
        "gamma1": 1.0 + 0.1 * jax.random.normal(ks[2], (2, fmid), jnp.float32),
        "beta1": 0.1 * jax.random.normal(ks[3], (2, fmid), jnp.float32),
        "conv0_w": 0.1 * jax.random.normal(ks[4], (fmid, fin, 3, 3), jnp.float32),
        "conv0_b": 0.05 * jax.random.normal(ks[5], (fmid,), jnp.float32),
        "conv1_w": 0.1 * jax.random.normal(ks[6], (fout, fmid, 3, 3), jnp.float32),
        "conv1_b": 0.05 * jax.random.normal(ks[7], (fout,), jnp.float32),
        "skip_w": (0.1 * jax.random.normal(ks[8], (fout, fin, 1, 1), jnp.float32)
                   if fin != fout else None),
    }


if __name__ == "__main__":
    H, W = 16, 16
    key = jax.random.PRNGKey(0)
    kA, kB, kC = jax.random.split(key, 3)

    def run_checks(name, N, fin, fout, k, f32_tol, bf16_tol=None):
        kx, kseg, kp = jax.random.split(k, 3)
        x = jax.random.normal(kx, (N, fin, H, W), jnp.float32)
        seg = jax.random.bernoulli(kseg, 0.5, (N, 1, H, W)).astype(jnp.int32)
        params = _make_params(kp, fin, fout)

        # exact-precision run (f32 MXU operands) vs pure-f32 reference
        out = jax.block_until_ready(
            edade_resnet_block(x, seg, params, compute_dtype=jnp.float32))
        ref = jax.block_until_ready(_ref_forward(x, seg, params, jnp.float32))
        assert out.shape == (N, fout, H, W)
        err = float(jnp.max(jnp.abs(out - ref)))
        assert jnp.allclose(out, ref, rtol=f32_tol, atol=f32_tol), (name, err)

        if bf16_tol is not None:
            # perf config: bf16 MXU operands + f32 accumulation, compared to a
            # reference that uses the same matmul-operand precision.
            out = jax.block_until_ready(edade_resnet_block(x, seg, params))
            ref = jax.block_until_ready(
                _ref_forward(x, seg, params, jnp.bfloat16))
            err = float(jnp.max(jnp.abs(out - ref)))
            assert jnp.allclose(out, ref, rtol=bf16_tol, atol=bf16_tol), (name, err)

    # A: fin != fout -> fused 1x1 skip; N=2 -> b_tile=1, grid=2
    run_checks("A", 2, 4, 8, kA, 2e-4, 1e-2)
    # B: fin == fout -> identity skip (no skip weights)
    run_checks("B", 2, 8, 8, kB, 2e-4)
    # C: N=8 -> b_tile=4: batched lane layout, MXU instance-norm stats,
    #    cross-image im2col masks all exercised.
    run_checks("C", 8, 4, 8, kC, 5e-4, 1e-2)

    print("KERNEL_OK")
</pallas_src>

<mosaic_0001>
module attributes {stable_mosaic.version = 11 : i64} {
  func.func @kernel(%arg0: i32, %arg1: memref<1x8x256xf32, #tpu.memory_space<vmem>>, %arg2: memref<1x1x256xi32, #tpu.memory_space<vmem>>, %arg3: memref<9x1x256xf32, #tpu.memory_space<vmem>>, %arg4: memref<2x8x1xf32, #tpu.memory_space<vmem>>, %arg5: memref<2x8x1xf32, #tpu.memory_space<vmem>>, %arg6: memref<2x8x1xf32, #tpu.memory_space<vmem>>, %arg7: memref<2x8x1xf32, #tpu.memory_space<vmem>>, %arg8: memref<8x72xf32, #tpu.memory_space<vmem>>, %arg9: memref<8x80xf32, #tpu.memory_space<vmem>>, %arg10: memref<8x1xf32, #tpu.memory_space<vmem>>, %arg11: memref<1x8x256xf32, #tpu.memory_space<vmem>>) attributes {dimension_semantics = [#tpu.dimension_semantics<parallel>], iteration_bounds = array<i64: 2>, scalar_prefetch = 0 : i64, scratch_operands = 0 : i64, tpu.core_type = #tpu.core_type<tc>, window_params = [{transform_indices = @transform_0, window_bounds = array<i64: 1, 8, 256>}, {transform_indices = @transform_1, window_bounds = array<i64: 1, 1, 256>}, {pipeline_mode = #tpu.pipeline_mode<synchronous>, transform_indices = @transform_2, window_bounds = array<i64: 9, 1, 256>}, {pipeline_mode = #tpu.pipeline_mode<synchronous>, transform_indices = @transform_3, window_bounds = array<i64: 2, 8, 1>}, {pipeline_mode = #tpu.pipeline_mode<synchronous>, transform_indices = @transform_4, window_bounds = array<i64: 2, 8, 1>}, {pipeline_mode = #tpu.pipeline_mode<synchronous>, transform_indices = @transform_5, window_bounds = array<i64: 2, 8, 1>}, {pipeline_mode = #tpu.pipeline_mode<synchronous>, transform_indices = @transform_6, window_bounds = array<i64: 2, 8, 1>}, {pipeline_mode = #tpu.pipeline_mode<synchronous>, transform_indices = @transform_7, window_bounds = array<i64: 8, 72>}, {pipeline_mode = #tpu.pipeline_mode<synchronous>, transform_indices = @transform_8, window_bounds = array<i64: 8, 80>}, {pipeline_mode = #tpu.pipeline_mode<synchronous>, transform_indices = @transform_9, window_bounds = array<i64: 8, 1>}, {transform_indices = @transform_10, window_bounds = array<i64: 1, 8, 256>}]} {
    %c0 = arith.constant 0 : index
    %c0_0 = arith.constant 0 : index
    %c0_1 = arith.constant 0 : index
    %0 = vector.load %arg1[%c0, %c0_0, %c0_1] : memref<1x8x256xf32, #tpu.memory_space<vmem>>, vector<1x8x256xf32>
    %1 = vector.shape_cast %0 : vector<1x8x256xf32> to vector<8x256xf32>
    %c0_2 = arith.constant 0 : index
    %c0_3 = arith.constant 0 : index
    %c0_4 = arith.constant 0 : index
    %2 = vector.load %arg2[%c0_2, %c0_3, %c0_4] : memref<1x1x256xi32, #tpu.memory_space<vmem>>, vector<1x1x256xi32>
    %3 = vector.shape_cast %2 : vector<1x1x256xi32> to vector<1x256xi32>
    %c0_i32 = arith.constant 0 : i32
    %4 = vector.broadcast %c0_i32 : i32 to vector<1x256xi32>
    %5 = arith.cmpi eq, %3, %4 : vector<1x256xi32>
    %c0_5 = arith.constant 0 : index
    %c0_6 = arith.constant 0 : index
    %c0_7 = arith.constant 0 : index
    %6 = vector.load %arg3[%c0_5, %c0_6, %c0_7] : memref<9x1x256xf32, #tpu.memory_space<vmem>>, vector<9x1x256xf32>
    %c0_8 = arith.constant 0 : index
    %c0_9 = arith.constant 0 : index
    %7 = vector.load %arg8[%c0_8, %c0_9] : memref<8x72xf32, #tpu.memory_space<vmem>>, vector<8x72xf32>
    %c0_10 = arith.constant 0 : index
    %c0_11 = arith.constant 0 : index
    %8 = vector.load %arg9[%c0_10, %c0_11] : memref<8x80xf32, #tpu.memory_space<vmem>>, vector<8x80xf32>
    %c0_12 = arith.constant 0 : index
    %c0_13 = arith.constant 0 : index
    %9 = vector.load %arg10[%c0_12, %c0_13] : memref<8x1xf32, #tpu.memory_space<vmem>>, vector<8x1xf32>
    %c0_14 = arith.constant 0 : index
    %c0_15 = arith.constant 0 : index
    %c0_16 = arith.constant 0 : index
    %10 = vector.load %arg4[%c0_14, %c0_15, %c0_16] : memref<2x8x1xf32, #tpu.memory_space<vmem>>, vector<2x8x1xf32>
    %c0_17 = arith.constant 0 : index
    %c0_18 = arith.constant 0 : index
    %c0_19 = arith.constant 0 : index
    %11 = vector.load %arg5[%c0_17, %c0_18, %c0_19] : memref<2x8x1xf32, #tpu.memory_space<vmem>>, vector<2x8x1xf32>
    %c0_20 = arith.constant 0 : index
    %c0_21 = arith.constant 0 : index
    %c0_22 = arith.constant 0 : index
    %12 = vector.load %arg6[%c0_20, %c0_21, %c0_22] : memref<2x8x1xf32, #tpu.memory_space<vmem>>, vector<2x8x1xf32>
    %c0_23 = arith.constant 0 : index
    %c0_24 = arith.constant 0 : index
    %c0_25 = arith.constant 0 : index
    %13 = vector.load %arg7[%c0_23, %c0_24, %c0_25] : memref<2x8x1xf32, #tpu.memory_space<vmem>>, vector<2x8x1xf32>
    %cst = arith.constant dense<0.000000e+00> : vector<8xf32>
    %14 = vector.multi_reduction <add>, %1, %cst [1] : vector<8x256xf32> to vector<8xf32>
    %15 = vector.shape_cast %14 : vector<8xf32> to vector<8x1xf32>
    %cst_26 = arith.constant 2.560000e+02 : f32
    %16 = vector.broadcast %cst_26 : f32 to vector<8x1xf32>
    %17 = arith.divf %15, %16 : vector<8x1xf32>
    %18 = arith.mulf %1, %1 : vector<8x256xf32>
    %cst_27 = arith.constant dense<0.000000e+00> : vector<8xf32>
    %19 = vector.multi_reduction <add>, %18, %cst_27 [1] : vector<8x256xf32> to vector<8xf32>
    %20 = vector.shape_cast %19 : vector<8xf32> to vector<8x1xf32>
    %cst_28 = arith.constant 2.560000e+02 : f32
    %21 = vector.broadcast %cst_28 : f32 to vector<8x1xf32>
    %22 = arith.divf %20, %21 : vector<8x1xf32>
    %23 = arith.mulf %17, %17 : vector<8x1xf32>
    %24 = arith.subf %22, %23 : vector<8x1xf32>
    %cst_29 = arith.constant 0.000000e+00 : f32
    %25 = vector.broadcast %cst_29 : f32 to vector<8x1xf32>
    %26 = arith.maximumf %24, %25 : vector<8x1xf32>
    %cst_30 = arith.constant 9.99999974E-6 : f32
    %27 = vector.broadcast %cst_30 : f32 to vector<8x1xf32>
    %28 = arith.addf %26, %27 : vector<8x1xf32>
    %29 = math.rsqrt %28 : vector<8x1xf32>
    %cst_31 = arith.constant 0.000000e+00 : f32
    %30 = vector.broadcast %cst_31 : f32 to vector<8x1xf32>
    %31 = arith.subf %30, %17 : vector<8x1xf32>
    %32 = arith.mulf %31, %29 : vector<8x1xf32>
    %33 = vector.broadcast %29 : vector<8x1xf32> to vector<8x256xf32>
    %34 = arith.mulf %1, %33 : vector<8x256xf32>
    %35 = vector.broadcast %32 : vector<8x1xf32> to vector<8x256xf32>
    %36 = arith.addf %34, %35 : vector<8x256xf32>
    %37 = vector.extract_strided_slice %10 {offsets = [0, 0, 0], sizes = [1, 8, 1], strides = [1, 1, 1]} : vector<2x8x1xf32> to vector<1x8x1xf32>
    %38 = vector.shape_cast %37 : vector<1x8x1xf32> to vector<8x1xf32>
    %39 = vector.extract_strided_slice %10 {offsets = [1, 0, 0], sizes = [1, 8, 1], strides = [1, 1, 1]} : vector<2x8x1xf32> to vector<1x8x1xf32>
    %40 = vector.shape_cast %39 : vector<1x8x1xf32> to vector<8x1xf32>
    %41 = vector.shape_cast %5 : vector<1x256xi1> to vector<1x256xi1>
    %42 = vector.broadcast %41 : vector<1x256xi1> to vector<8x256xi1>
    %43 = vector.shape_cast %38 : vector<8x1xf32> to vector<8x1xf32>
    %44 = vector.broadcast %43 : vector<8x1xf32> to vector<8x256xf32>
    %45 = vector.shape_cast %40 : vector<8x1xf32> to vector<8x1xf32>
    %46 = vector.broadcast %45 : vector<8x1xf32> to vector<8x256xf32>
    %47 = arith.select %42, %44, %46 : vector<8x256xi1>, vector<8x256xf32>
    %48 = vector.extract_strided_slice %11 {offsets = [0, 0, 0], sizes = [1, 8, 1], strides = [1, 1, 1]} : vector<2x8x1xf32> to vector<1x8x1xf32>
    %49 = vector.shape_cast %48 : vector<1x8x1xf32> to vector<8x1xf32>
    %50 = vector.extract_strided_slice %11 {offsets = [1, 0, 0], sizes = [1, 8, 1], strides = [1, 1, 1]} : vector<2x8x1xf32> to vector<1x8x1xf32>
    %51 = vector.shape_cast %50 : vector<1x8x1xf32> to vector<8x1xf32>
    %52 = vector.shape_cast %5 : vector<1x256xi1> to vector<1x256xi1>
    %53 = vector.broadcast %52 : vector<1x256xi1> to vector<8x256xi1>
    %54 = vector.shape_cast %49 : vector<8x1xf32> to vector<8x1xf32>
    %55 = vector.broadcast %54 : vector<8x1xf32> to vector<8x256xf32>
    %56 = vector.shape_cast %51 : vector<8x1xf32> to vector<8x1xf32>
    %57 = vector.broadcast %56 : vector<8x1xf32> to vector<8x256xf32>
    %58 = arith.select %53, %55, %57 : vector<8x256xi1>, vector<8x256xf32>
    %59 = arith.mulf %36, %47 : vector<8x256xf32>
    %60 = arith.addf %59, %58 : vector<8x256xf32>
    %cst_32 = arith.constant 0.000000e+00 : f32
    %61 = vector.broadcast %cst_32 : f32 to vector<8x256xf32>
    %62 = arith.cmpf ogt, %60, %61 : vector<8x256xf32>
    %cst_33 = arith.constant 2.000000e-01 : f32
    %63 = vector.broadcast %cst_33 : f32 to vector<8x256xf32>
    %64 = arith.mulf %63, %60 : vector<8x256xf32>
    %65 = arith.select %62, %60, %64 : vector<8x256xi1>, vector<8x256xf32>
    %c17_i32 = arith.constant 17 : i32
    %66 = tpu.dynamic_rotate %65 by %c17_i32 dim 1 : vector<8x256xf32>, i32 -> vector<8x256xf32>
    %67 = vector.extract_strided_slice %6 {offsets = [0, 0, 0], sizes = [1, 1, 256], strides = [1, 1, 1]} : vector<9x1x256xf32> to vector<1x1x256xf32>
    %68 = vector.shape_cast %67 : vector<1x1x256xf32> to vector<1x256xf32>
    %69 = vector.broadcast %68 : vector<1x256xf32> to vector<8x256xf32>
    %70 = arith.mulf %66, %69 : vector<8x256xf32>
    %c16_i32 = arith.constant 16 : i32
    %71 = tpu.dynamic_rotate %65 by %c16_i32 dim 1 : vector<8x256xf32>, i32 -> vector<8x256xf32>
    %72 = vector.extract_strided_slice %6 {offsets = [1, 0, 0], sizes = [1, 1, 256], strides = [1, 1, 1]} : vector<9x1x256xf32> to vector<1x1x256xf32>
    %73 = vector.shape_cast %72 : vector<1x1x256xf32> to vector<1x256xf32>
    %74 = vector.broadcast %73 : vector<1x256xf32> to vector<8x256xf32>
    %75 = arith.mulf %71, %74 : vector<8x256xf32>
    %c15_i32 = arith.constant 15 : i32
    %76 = tpu.dynamic_rotate %65 by %c15_i32 dim 1 : vector<8x256xf32>, i32 -> vector<8x256xf32>
    %77 = vector.extract_strided_slice %6 {offsets = [2, 0, 0], sizes = [1, 1, 256], strides = [1, 1, 1]} : vector<9x1x256xf32> to vector<1x1x256xf32>
    %78 = vector.shape_cast %77 : vector<1x1x256xf32> to vector<1x256xf32>
    %79 = vector.broadcast %78 : vector<1x256xf32> to vector<8x256xf32>
    %80 = arith.mulf %76, %79 : vector<8x256xf32>
    %c1_i32 = arith.constant 1 : i32
    %81 = tpu.dynamic_rotate %65 by %c1_i32 dim 1 : vector<8x256xf32>, i32 -> vector<8x256xf32>
    %82 = vector.extract_strided_slice %6 {offsets = [3, 0, 0], sizes = [1, 1, 256], strides = [1, 1, 1]} : vector<9x1x256xf32> to vector<1x1x256xf32>
    %83 = vector.shape_cast %82 : vector<1x1x256xf32> to vector<1x256xf32>
    %84 = vector.broadcast %83 : vector<1x256xf32> to vector<8x256xf32>
    %85 = arith.mulf %81, %84 : vector<8x256xf32>
    %c255_i32 = arith.constant 255 : i32
    %86 = tpu.dynamic_rotate %65 by %c255_i32 dim 1 : vector<8x256xf32>, i32 -> vector<8x256xf32>
    %87 = vector.extract_strided_slice %6 {offsets = [5, 0, 0], sizes = [1, 1, 256], strides = [1, 1, 1]} : vector<9x1x256xf32> to vector<1x1x256xf32>
    %88 = vector.shape_cast %87 : vector<1x1x256xf32> to vector<1x256xf32>
    %89 = vector.broadcast %88 : vector<1x256xf32> to vector<8x256xf32>
    %90 = arith.mulf %86, %89 : vector<8x256xf32>
    %c241_i32 = arith.constant 241 : i32
    %91 = tpu.dynamic_rotate %65 by %c241_i32 dim 1 : vector<8x256xf32>, i32 -> vector<8x256xf32>
    %92 = vector.extract_strided_slice %6 {offsets = [6, 0, 0], sizes = [1, 1, 256], strides = [1, 1, 1]} : vector<9x1x256xf32> to vector<1x1x256xf32>
    %93 = vector.shape_cast %92 : vector<1x1x256xf32> to vector<1x256xf32>
    %94 = vector.broadcast %93 : vector<1x256xf32> to vector<8x256xf32>
    %95 = arith.mulf %91, %94 : vector<8x256xf32>
    %c240_i32 = arith.constant 240 : i32
    %96 = tpu.dynamic_rotate %65 by %c240_i32 dim 1 : vector<8x256xf32>, i32 -> vector<8x256xf32>
    %97 = vector.extract_strided_slice %6 {offsets = [7, 0, 0], sizes = [1, 1, 256], strides = [1, 1, 1]} : vector<9x1x256xf32> to vector<1x1x256xf32>
    %98 = vector.shape_cast %97 : vector<1x1x256xf32> to vector<1x256xf32>
    %99 = vector.broadcast %98 : vector<1x256xf32> to vector<8x256xf32>
    %100 = arith.mulf %96, %99 : vector<8x256xf32>
    %c239_i32 = arith.constant 239 : i32
    %101 = tpu.dynamic_rotate %65 by %c239_i32 dim 1 : vector<8x256xf32>, i32 -> vector<8x256xf32>
    %102 = vector.extract_strided_slice %6 {offsets = [8, 0, 0], sizes = [1, 1, 256], strides = [1, 1, 1]} : vector<9x1x256xf32> to vector<1x1x256xf32>
    %103 = vector.shape_cast %102 : vector<1x1x256xf32> to vector<1x256xf32>
    %104 = vector.broadcast %103 : vector<1x256xf32> to vector<8x256xf32>
    %105 = arith.mulf %101, %104 : vector<8x256xf32>
    %106 = tpu.concatenate %70, %75, %80, %85, %65, %90, %95, %100, %105 in 0 : vector<8x256xf32>, vector<8x256xf32>, vector<8x256xf32>, vector<8x256xf32>, vector<8x256xf32>, vector<8x256xf32>, vector<8x256xf32>, vector<8x256xf32>, vector<8x256xf32> -> vector<72x256xf32>
    %cst_34 = arith.constant dense<0.000000e+00> : vector<8x256xf32>
    %107 = tpu.matmul %7, %106, %cst_34 {dimension_numbers = #tpu.dot_dimension_numbers<[1], [0], [0], [1], [0, 0, 1, 1], [], []>} : vector<8x72xf32>, vector<72x256xf32>, vector<8x256xf32> -> vector<8x256xf32>
    %cst_35 = arith.constant dense<0.000000e+00> : vector<8xf32>
    %108 = vector.multi_reduction <add>, %107, %cst_35 [1] : vector<8x256xf32> to vector<8xf32>
    %109 = vector.shape_cast %108 : vector<8xf32> to vector<8x1xf32>
    %cst_36 = arith.constant 2.560000e+02 : f32
    %110 = vector.broadcast %cst_36 : f32 to vector<8x1xf32>
    %111 = arith.divf %109, %110 : vector<8x1xf32>
    %112 = arith.mulf %107, %107 : vector<8x256xf32>
    %cst_37 = arith.constant dense<0.000000e+00> : vector<8xf32>
    %113 = vector.multi_reduction <add>, %112, %cst_37 [1] : vector<8x256xf32> to vector<8xf32>
    %114 = vector.shape_cast %113 : vector<8xf32> to vector<8x1xf32>
    %cst_38 = arith.constant 2.560000e+02 : f32
    %115 = vector.broadcast %cst_38 : f32 to vector<8x1xf32>
    %116 = arith.divf %114, %115 : vector<8x1xf32>
    %117 = arith.mulf %111, %111 : vector<8x1xf32>
    %118 = arith.subf %116, %117 : vector<8x1xf32>
    %cst_39 = arith.constant 0.000000e+00 : f32
    %119 = vector.broadcast %cst_39 : f32 to vector<8x1xf32>
    %120 = arith.maximumf %118, %119 : vector<8x1xf32>
    %cst_40 = arith.constant 9.99999974E-6 : f32
    %121 = vector.broadcast %cst_40 : f32 to vector<8x1xf32>
    %122 = arith.addf %120, %121 : vector<8x1xf32>
    %123 = math.rsqrt %122 : vector<8x1xf32>
    %cst_41 = arith.constant 0.000000e+00 : f32
    %124 = vector.broadcast %cst_41 : f32 to vector<8x1xf32>
    %125 = arith.subf %124, %111 : vector<8x1xf32>
    %126 = arith.mulf %125, %123 : vector<8x1xf32>
    %127 = vector.broadcast %123 : vector<8x1xf32> to vector<8x256xf32>
    %128 = arith.mulf %107, %127 : vector<8x256xf32>
    %129 = vector.broadcast %126 : vector<8x1xf32> to vector<8x256xf32>
    %130 = arith.addf %128, %129 : vector<8x256xf32>
    %131 = vector.extract_strided_slice %12 {offsets = [0, 0, 0], sizes = [1, 8, 1], strides = [1, 1, 1]} : vector<2x8x1xf32> to vector<1x8x1xf32>
    %132 = vector.shape_cast %131 : vector<1x8x1xf32> to vector<8x1xf32>
    %133 = vector.extract_strided_slice %12 {offsets = [1, 0, 0], sizes = [1, 8, 1], strides = [1, 1, 1]} : vector<2x8x1xf32> to vector<1x8x1xf32>
    %134 = vector.shape_cast %133 : vector<1x8x1xf32> to vector<8x1xf32>
    %135 = vector.shape_cast %5 : vector<1x256xi1> to vector<1x256xi1>
    %136 = vector.broadcast %135 : vector<1x256xi1> to vector<8x256xi1>
    %137 = vector.shape_cast %132 : vector<8x1xf32> to vector<8x1xf32>
    %138 = vector.broadcast %137 : vector<8x1xf32> to vector<8x256xf32>
    %139 = vector.shape_cast %134 : vector<8x1xf32> to vector<8x1xf32>
    %140 = vector.broadcast %139 : vector<8x1xf32> to vector<8x256xf32>
    %141 = arith.select %136, %138, %140 : vector<8x256xi1>, vector<8x256xf32>
    %142 = vector.extract_strided_slice %13 {offsets = [0, 0, 0], sizes = [1, 8, 1], strides = [1, 1, 1]} : vector<2x8x1xf32> to vector<1x8x1xf32>
    %143 = vector.shape_cast %142 : vector<1x8x1xf32> to vector<8x1xf32>
    %144 = vector.extract_strided_slice %13 {offsets = [1, 0, 0], sizes = [1, 8, 1], strides = [1, 1, 1]} : vector<2x8x1xf32> to vector<1x8x1xf32>
    %145 = vector.shape_cast %144 : vector<1x8x1xf32> to vector<8x1xf32>
    %146 = vector.shape_cast %5 : vector<1x256xi1> to vector<1x256xi1>
    %147 = vector.broadcast %146 : vector<1x256xi1> to vector<8x256xi1>
    %148 = vector.shape_cast %143 : vector<8x1xf32> to vector<8x1xf32>
    %149 = vector.broadcast %148 : vector<8x1xf32> to vector<8x256xf32>
    %150 = vector.shape_cast %145 : vector<8x1xf32> to vector<8x1xf32>
    %151 = vector.broadcast %150 : vector<8x1xf32> to vector<8x256xf32>
    %152 = arith.select %147, %149, %151 : vector<8x256xi1>, vector<8x256xf32>
    %153 = arith.mulf %130, %141 : vector<8x256xf32>
    %154 = arith.addf %153, %152 : vector<8x256xf32>
    %cst_42 = arith.constant 0.000000e+00 : f32
    %155 = vector.broadcast %cst_42 : f32 to vector<8x256xf32>
    %156 = arith.cmpf ogt, %154, %155 : vector<8x256xf32>
    %cst_43 = arith.constant 2.000000e-01 : f32
    %157 = vector.broadcast %cst_43 : f32 to vector<8x256xf32>
    %158 = arith.mulf %157, %154 : vector<8x256xf32>
    %159 = arith.select %156, %154, %158 : vector<8x256xi1>, vector<8x256xf32>
    %c17_i32_44 = arith.constant 17 : i32
    %160 = tpu.dynamic_rotate %159 by %c17_i32_44 dim 1 : vector<8x256xf32>, i32 -> vector<8x256xf32>
    %161 = vector.extract_strided_slice %6 {offsets = [0, 0, 0], sizes = [1, 1, 256], strides = [1, 1, 1]} : vector<9x1x256xf32> to vector<1x1x256xf32>
    %162 = vector.shape_cast %161 : vector<1x1x256xf32> to vector<1x256xf32>
    %163 = vector.broadcast %162 : vector<1x256xf32> to vector<8x256xf32>
    %164 = arith.mulf %160, %163 : vector<8x256xf32>
    %c16_i32_45 = arith.constant 16 : i32
    %165 = tpu.dynamic_rotate %159 by %c16_i32_45 dim 1 : vector<8x256xf32>, i32 -> vector<8x256xf32>
    %166 = vector.extract_strided_slice %6 {offsets = [1, 0, 0], sizes = [1, 1, 256], strides = [1, 1, 1]} : vector<9x1x256xf32> to vector<1x1x256xf32>
    %167 = vector.shape_cast %166 : vector<1x1x256xf32> to vector<1x256xf32>
    %168 = vector.broadcast %167 : vector<1x256xf32> to vector<8x256xf32>
    %169 = arith.mulf %165, %168 : vector<8x256xf32>
    %c15_i32_46 = arith.constant 15 : i32
    %170 = tpu.dynamic_rotate %159 by %c15_i32_46 dim 1 : vector<8x256xf32>, i32 -> vector<8x256xf32>
    %171 = vector.extract_strided_slice %6 {offsets = [2, 0, 0], sizes = [1, 1, 256], strides = [1, 1, 1]} : vector<9x1x256xf32> to vector<1x1x256xf32>
    %172 = vector.shape_cast %171 : vector<1x1x256xf32> to vector<1x256xf32>
    %173 = vector.broadcast %172 : vector<1x256xf32> to vector<8x256xf32>
    %174 = arith.mulf %170, %173 : vector<8x256xf32>
    %c1_i32_47 = arith.constant 1 : i32
    %175 = tpu.dynamic_rotate %159 by %c1_i32_47 dim 1 : vector<8x256xf32>, i32 -> vector<8x256xf32>
    %176 = vector.extract_strided_slice %6 {offsets = [3, 0, 0], sizes = [1, 1, 256], strides = [1, 1, 1]} : vector<9x1x256xf32> to vector<1x1x256xf32>
    %177 = vector.shape_cast %176 : vector<1x1x256xf32> to vector<1x256xf32>
    %178 = vector.broadcast %177 : vector<1x256xf32> to vector<8x256xf32>
    %179 = arith.mulf %175, %178 : vector<8x256xf32>
    %c255_i32_48 = arith.constant 255 : i32
    %180 = tpu.dynamic_rotate %159 by %c255_i32_48 dim 1 : vector<8x256xf32>, i32 -> vector<8x256xf32>
    %181 = vector.extract_strided_slice %6 {offsets = [5, 0, 0], sizes = [1, 1, 256], strides = [1, 1, 1]} : vector<9x1x256xf32> to vector<1x1x256xf32>
    %182 = vector.shape_cast %181 : vector<1x1x256xf32> to vector<1x256xf32>
    %183 = vector.broadcast %182 : vector<1x256xf32> to vector<8x256xf32>
    %184 = arith.mulf %180, %183 : vector<8x256xf32>
    %c241_i32_49 = arith.constant 241 : i32
    %185 = tpu.dynamic_rotate %159 by %c241_i32_49 dim 1 : vector<8x256xf32>, i32 -> vector<8x256xf32>
    %186 = vector.extract_strided_slice %6 {offsets = [6, 0, 0], sizes = [1, 1, 256], strides = [1, 1, 1]} : vector<9x1x256xf32> to vector<1x1x256xf32>
    %187 = vector.shape_cast %186 : vector<1x1x256xf32> to vector<1x256xf32>
    %188 = vector.broadcast %187 : vector<1x256xf32> to vector<8x256xf32>
    %189 = arith.mulf %185, %188 : vector<8x256xf32>
    %c240_i32_50 = arith.constant 240 : i32
    %190 = tpu.dynamic_rotate %159 by %c240_i32_50 dim 1 : vector<8x256xf32>, i32 -> vector<8x256xf32>
    %191 = vector.extract_strided_slice %6 {offsets = [7, 0, 0], sizes = [1, 1, 256], strides = [1, 1, 1]} : vector<9x1x256xf32> to vector<1x1x256xf32>
    %192 = vector.shape_cast %191 : vector<1x1x256xf32> to vector<1x256xf32>
    %193 = vector.broadcast %192 : vector<1x256xf32> to vector<8x256xf32>
    %194 = arith.mulf %190, %193 : vector<8x256xf32>
    %c239_i32_51 = arith.constant 239 : i32
    %195 = tpu.dynamic_rotate %159 by %c239_i32_51 dim 1 : vector<8x256xf32>, i32 -> vector<8x256xf32>
    %196 = vector.extract_strided_slice %6 {offsets = [8, 0, 0], sizes = [1, 1, 256], strides = [1, 1, 1]} : vector<9x1x256xf32> to vector<1x1x256xf32>
    %197 = vector.shape_cast %196 : vector<1x1x256xf32> to vector<1x256xf32>
    %198 = vector.broadcast %197 : vector<1x256xf32> to vector<8x256xf32>
    %199 = arith.mulf %195, %198 : vector<8x256xf32>
    %200 = tpu.concatenate %164, %169, %174, %179, %159, %184, %189, %194, %199, %1 in 0 : vector<8x256xf32>, vector<8x256xf32>, vector<8x256xf32>, vector<8x256xf32>, vector<8x256xf32>, vector<8x256xf32>, vector<8x256xf32>, vector<8x256xf32>, vector<8x256xf32>, vector<8x256xf32> -> vector<80x256xf32>
    %cst_52 = arith.constant dense<0.000000e+00> : vector<8x256xf32>
    %201 = tpu.matmul %8, %200, %cst_52 {dimension_numbers = #tpu.dot_dimension_numbers<[1], [0], [0], [1], [0, 0, 1, 1], [], []>} : vector<8x80xf32>, vector<80x256xf32>, vector<8x256xf32> -> vector<8x256xf32>
    %202 = vector.broadcast %9 : vector<8x1xf32> to vector<8x256xf32>
    %203 = arith.addf %201, %202 : vector<8x256xf32>
    %c0_53 = arith.constant 0 : index
    %c0_54 = arith.constant 0 : index
    %c0_55 = arith.constant 0 : index
    %204 = vector.load %arg11[%c0_53, %c0_54, %c0_55] : memref<1x8x256xf32, #tpu.memory_space<vmem>>, vector<1x8x256xf32>
    %205 = vector.shape_cast %204 : vector<1x8x256xf32> to vector<8x256xf32>
    %206 = vector.shape_cast %203 : vector<8x256xf32> to vector<1x8x256xf32>
    tpu.vector_store %arg11[%c0_53, %c0_54, %c0_55], %206 {strides = array<i32>} : memref<1x8x256xf32, #tpu.memory_space<vmem>>, vector<1x8x256xf32>,
    return
  }
  func.func @transform_0(%arg0: i32) -> (i32, i32, i32) {
    %c0_i32 = arith.constant 0 : i32
    %c0_i32_0 = arith.constant 0 : i32
    %c0_i32_1 = arith.constant 0 : i32
    return %arg0, %c0_i32, %c0_i32_0 : i32, i32, i32
  }
  func.func @transform_1(%arg0: i32) -> (i32, i32, i32) {
    %c0_i32 = arith.constant 0 : i32
    %c0_i32_0 = arith.constant 0 : i32
    %c0_i32_1 = arith.constant 0 : i32
    return %arg0, %c0_i32, %c0_i32_0 : i32, i32, i32
  }
  func.func @transform_2(%arg0: i32) -> (i32, i32, i32) {
    %c0_i32 = arith.constant 0 : i32
    %c0_i32_0 = arith.constant 0 : i32
    %c0_i32_1 = arith.constant 0 : i32
    %c0_i32_2 = arith.constant 0 : i32
    return %c0_i32, %c0_i32_0, %c0_i32_1 : i32, i32, i32
  }
  func.func @transform_3(%arg0: i32) -> (i32, i32, i32) {
    %c0_i32 = arith.constant 0 : i32
    %c0_i32_0 = arith.constant 0 : i32
    %c0_i32_1 = arith.constant 0 : i32
    %c0_i32_2 = arith.constant 0 : i32
    return %c0_i32, %c0_i32_0, %c0_i32_1 : i32, i32, i32
  }
  func.func @transform_4(%arg0: i32) -> (i32, i32, i32) {
    %c0_i32 = arith.constant 0 : i32
    %c0_i32_0 = arith.constant 0 : i32
    %c0_i32_1 = arith.constant 0 : i32
    %c0_i32_2 = arith.constant 0 : i32
    return %c0_i32, %c0_i32_0, %c0_i32_1 : i32, i32, i32
  }
  func.func @transform_5(%arg0: i32) -> (i32, i32, i32) {
    %c0_i32 = arith.constant 0 : i32
    %c0_i32_0 = arith.constant 0 : i32
    %c0_i32_1 = arith.constant 0 : i32
    %c0_i32_2 = arith.constant 0 : i32
    return %c0_i32, %c0_i32_0, %c0_i32_1 : i32, i32, i32
  }
  func.func @transform_6(%arg0: i32) -> (i32, i32, i32) {
    %c0_i32 = arith.constant 0 : i32
    %c0_i32_0 = arith.constant 0 : i32
    %c0_i32_1 = arith.constant 0 : i32
    %c0_i32_2 = arith.constant 0 : i32
    return %c0_i32, %c0_i32_0, %c0_i32_1 : i32, i32, i32
  }
  func.func @transform_7(%arg0: i32) -> (i32, i32) {
    %c0_i32 = arith.constant 0 : i32
    %c0_i32_0 = arith.constant 0 : i32
    %c0_i32_1 = arith.constant 0 : i32
    return %c0_i32, %c0_i32_0 : i32, i32
  }
  func.func @transform_8(%arg0: i32) -> (i32, i32) {
    %c0_i32 = arith.constant 0 : i32
    %c0_i32_0 = arith.constant 0 : i32
    %c0_i32_1 = arith.constant 0 : i32
    return %c0_i32, %c0_i32_0 : i32, i32
  }
  func.func @transform_9(%arg0: i32) -> (i32, i32) {
    %c0_i32 = arith.constant 0 : i32
    %c0_i32_0 = arith.constant 0 : i32
    %c0_i32_1 = arith.constant 0 : i32
    return %c0_i32, %c0_i32_0 : i32, i32
  }
  func.func @transform_10(%arg0: i32) -> (i32, i32, i32) {
    %c0_i32 = arith.constant 0 : i32
    %c0_i32_0 = arith.constant 0 : i32
    %c0_i32_1 = arith.constant 0 : i32
    return %arg0, %c0_i32, %c0_i32_0 : i32, i32, i32
  }
}

</mosaic_0001>

<bundles_post_ra>
// kernel: tpu_custom_call.1
= control target key start
LH: loop header
LB: loop body
LE: loop exit
PB: predicated region body
PF: predicated region fallthrough
CT: control target
= control target key end

     0   :  { %15 = vsyncpa [#allocation3], 0  ;;  %s1508_s0 = inlined_call_operand.vmem [shape: f32[2,8,256], index: 0, kind: input, shape index: {}]   ;;  %s1509_s1 = inlined_call_operand.vmem [shape: s32[2,1,256], index: 1, kind: input, shape index: {}]   ;;  %s1510_s2 = inlined_call_operand.vmem [shape: f32[9,1,256], index: 2, kind: input, shape index: {}]   ;;  %s1511_s3 = inlined_call_operand.vmem [shape: f32[2,8,1], index: 3, kind: input, shape index: {}]   ;;  %s1512_s4 = inlined_call_operand.vmem [shape: f32[2,8,1], index: 4, kind: input, shape index: {}]   ;;  %s1513_s5 = inlined_call_operand.vmem [shape: f32[2,8,1], index: 5, kind: input, shape index: {}]   ;;  %s1514_s6 = inlined_call_operand.vmem [shape: f32[2,8,1], index: 6, kind: input, shape index: {}]   ;;  %s1515_s7 = inlined_call_operand.vmem [shape: f32[8,72], index: 7, kind: input, shape index: {}]   ;;  %s1516_s8 = inlined_call_operand.vmem [shape: f32[8,80], index: 8, kind: input, shape index: {}]   ;;  %s1517_s9 = inlined_call_operand.vmem [shape: f32[8,1], index: 9, kind: input, shape index: {}]   ;;  %s1518_s10 = inlined_call_operand.hbm [shape: f32[2,8,256], index: 10, kind: output, shape index: {}]  }
   0x1   :  { %17 = vsyncpa [#allocation3 + $0x1], 0  ;;  %s1105_s13 = smov 0   ;;  %s1107_s14 = smov 0  }
   0x2   :  { %s1109_s15 = smov 0   ;;  %s1111_s16 = smov 0  }
   0x3 LB: > { %s1126_s17 = sadd.s32 4294967295, %s1038_s16   ;;  %s899_s18 = sadd.s32 4294967294, %s1038_s16   ;;  %s1038_s16 = sphi %s1111_s16, %s1543_s16   ;;  %s1034_s15 = sphi %s1109_s15, %s1542_s15   ;;  %s1030_s14 = sphi %s1107_s14, %s1541_s14   ;;  %s1026_s13 = sphi %s1105_s13, %s1540_s13  }
   0x4   : > { %s1130_s19 = sadd.s32 1, %s1038_s16   ;;  %s250_s20 = sadd.s32 1, %s1034_s15 }
   0x5   : > { %s247_s21 = ssub.s32 %s1038_s16, %s1130_s19  ;;  %p260_p0 = scmp.ne.s32.totalorder %s1034_s15, %s1030_s14 }
   0x6   : > { %p248_p1 = scmp.eq.s32.totalorder %s247_s21, 0  ;;  %p261_p2 = scmp.eq.s32.totalorder %s1126_s17, 1 }
   0x7   : > { %p266_p3 = scmp.ne.s32.totalorder %s1030_s14, %s1026_s13  ;;  %p267_p4 = scmp.eq.s32.totalorder %s899_s18, 1 }
   0x8   : > { %s1141_s22 = scalar_select %p248_p1, %s1034_s15, %s250_s20  }
   0x9   : > { %p1143_p5 = por %p261_p2, %p260_p0  ;;  %p1147_p6 = por %p267_p4, %p266_p3 }
   0xa   : > { %p902_p7 = scmp.ge.s32.totalorder %s1038_s16, 1  ;;  %p324_p8 = scmp.lt.s32.totalorder %s1038_s16, 3 }
   0xc   : > { %p325_p9 = pnand %p902_p7, %p324_p8 }
   0xd   : > { %p366_p10 = scmp.lt.s32.totalorder (!%p325_p9), %s1126_s17, 1  ;;  %s1043_s12 = smov (!%p325_p9), 112  }
   0xe   : > { %328 = sbr.rel (%p325_p9) target bundleno = 918 (0x396), region = 60  ;;  %s1523_s20 = smov (!%p325_p9), 127  }
   0xf   : > { %s1521_s21 = smov (!%p325_p9), 15   ;;  %s1527_s25 = smov (!%p325_p9), 1  }
  0x10   : > { %s1525_s26 = smov (!%p325_p9), 16   ;;  %s363_s28 = sand.u32 (!%p325_p9), 1, %s1030_s14  }
  0x13   : > { %v390_v0 = vld [vmem:[%s1511_s3] sm:$0xff]  ;;  %v1040_v2 = vmov 0   ;;  %s1161_s29 = scalar_select %p366_p10, %s1126_s17, 1  ;;  %v391_v6 = vld [vmem:[%s1511_s3 + $0x8] sm:$0xff]  ;;  %v1041_v11 = vmov 256.0  }
  0x14   : > { %v392_v1 = vld [vmem:[%s1512_s4] sm:$0xff]  ;;  %967 = vset.pattern.permute.xlu1 %v1040_v2  ;;  %968 = vset.pattern.permute.xlu2 %v1040_v2  ;;  %v393_v7 = vld [vmem:[%s1512_s4 + $0x8] sm:$0xff]  ;;  %970 = vrcp.f32 %v1041_v11 }
  0x15   : > { %442 = vperm.xlu1 %967, %v390_v0   ;;  %454 = vperm.xlu2 %968, %v392_v1   ;;  %s916_s30 = sshll.u32 %s1161_s29, 4  ;;  %s906_s27 = sshll.u32 %s1161_s29, 1  ;;  %v394_v61 = vld [vmem:[%s1513_s5] sm:$0xff]  ;;  %v395_v62 = vld [vmem:[%s1513_s5 + $0x8] sm:$0xff] }
  0x16   : > { %969 = vset.pattern.permute.xlu0 %v1040_v2  ;;  %s370_s18 = scalar_lea.vmem %s1508_s0, %s916_s30  ;;  %s374_s11 = scalar_lea.vmem %s1509_s1, %s906_s27  ;;  %v396_v63 = vld [vmem:[%s1514_s6] sm:$0xff]  ;;  %v397_v0 = vld [vmem:[%s1514_s6 + $0x8] sm:$0xff] }
  0x17   : > { %v375_v3 = vld [vmem:[%s370_s18] sm:$0xff]  ;;  %v376_v4 = vld [vmem:[%s370_s18 + $0x8] sm:$0xff]  ;;  %s1042_s29 = smov 111   ;;  %s1519_s18 = smov 113  }
  0x18   : > { %v398_v5 = vadd.f32 %v376_v4, %v375_v3  ;;  %775 = vmatpush.msra.mxu2 %v375_v3  ;;  %795 = vmatpush.msra.mxu3 %v376_v4  ;;  %v409_v8 = vmul.f32 %v375_v3, %v375_v3  ;;  %v410_v9 = vmul.f32 %v376_v4, %v376_v4  ;;  %v377_v26 = vld [vmem:[%s374_s11] sm:$0x3]  ;;  %s1049_s27 = smov 17   ;;  %s903_s30 = sshll.u32 %s363_s28, 4 }
  0x19   : > { %vm378_vm1 = vcmp.eq.s32.totalorder %v377_v26, 0  ;;  %v1287_v26 = vld [vmem:[%s1510_s2 + $0xa] sm:$0x3]  ;;  %v389_v40 = vld [vmem:[%s1517_s9] sm:$0xff] }
  0x1a   : > { %399 = vadd.xlane.f32.xlu0 %v398_v5  ;;  %v411_v10 = vadd.f32 %v410_v9, %v409_v8  ;;  %v971_v12 = vpop.eup %970  ;;  %v435_v32 = vsel %vm378_vm1, 1, %v1040_v2  ;;  %v478_v2 = vlaneseq  ;;  %vm588_vm1 = vcmask 588800  }
  0x1b   : > { %v402_v13 = vmul.f32 256.0, %v971_v12  ;;  %vm406_vm0 = vweird.f32 %v971_v12  ;;  %v436_v35 = vperm.slane %v435_v32, 0  ;;  %v437_v36 = vperm.slane %v435_v32, 1 }
  0x1d   : > { %447 = vperm.xlu1 %967, %v391_v6   ;;  %459 = vperm.xlu2 %968, %v393_v7   ;;  %v403_v14 = vsub.f32 1.0, %v402_v13  ;;  %vm1181_vm5 = vcmp.eq.s32.totalorder %v436_v35, 1  ;;  %vm1185_vm6 = vcmp.eq.s32.totalorder %v437_v36, 1 }
  0x1f   : > { %v404_v15 = vmul.f32 %v971_v12, %v403_v14  ;;  %v1266_v14 = vld [vmem:[%s1510_s2 + $0xe] sm:$0x3] }
  0x21   : > { %v405_v16 = vadd.f32 %v971_v12, %v404_v15  ;;  %v568_v15 = vperm.slane %v1266_v14, 0 }
  0x22   : > { %412 = vadd.xlane.f32.xlu0 %v411_v10 }
  0x23   : > { %v1173_v18 = vsel %vm406_vm0, %v971_v12, %v405_v16  ;;  %v569_v16 = vperm.slane %v1266_v14, 1 }
  0x6f   : > { %v455_v31 = vpop.permute.xlu2 %454 }
  0x77   : > { %v460_v48 = vpop.permute.xlu2 %459 }
  0x78   : > { %v462_v53 = vsel %vm1181_vm5, %v455_v31, %v460_v48  ;;  %v463_v54 = vsel %vm1185_vm6, %v455_v31, %v460_v48  ;;  %v541_v31 = vperm.slane %v1287_v26, 1 }
  0x87   : > { %v443_v29 = vpop.permute.xlu1 %442 }
  0x8d   : > { %v400_v17 = vpop.xlane.xlu0 %399 }
  0x8e   : > { %v408_v19 = vmul.f32 %v1173_v18, %v400_v17 }
  0x8f   : > { %v448_v41 = vpop.permute.xlu1 %447 }
  0x90   : > { %v415_v21 = vmul.f32 %v408_v19, %v408_v19  ;;  %v429_v38 = vsub.f32 0.0, %v408_v19  ;;  %v450_v49 = vsel %vm1181_vm5, %v443_v29, %v448_v41  ;;  %v451_v50 = vsel %vm1185_vm6, %v443_v29, %v448_v41 }
  0x95   : > { %v413_v20 = vpop.xlane.xlu0 %412 }
  0x96   : > { %v414_v22 = vmul.f32 %v413_v20, %v1173_v18 }
  0x98   : > { %v416_v23 = vsub.f32 %v414_v22, %v415_v21 }
  0x9a   : > { %v417_v24 = vmax.f32 %v416_v23, 0.0 }
  0x9c   : > { %v418_v25 = vadd.f32 1e-05, %v417_v24 }
  0x9e   : > { %972 = vrsqrt.f32 %v418_v25  ;;  %vm425_vm3 = vweird.f32 %v418_v25 }
  0xa4   : > { %v973_v27 = vpop.eup %972 }
  0xa5   : > { %v420_v28 = vmul.f32 %v973_v27, %v418_v25  ;;  %vm426_vm2 = vweird.f32 %v973_v27  ;;  %v1282_v25 = vld [vmem:[%s1510_s2 + $0xc] sm:$0x3] }
  0xa6   : > { %vm427_vm4 = vmor %vm425_vm3, %vm426_vm2 }
  0xa7   : > { %v421_v30 = vmul.f32 %v973_v27, %v420_v28  ;;  %v555_v28 = vperm.slane %v1282_v25, 1 }
  0xa9   : > { %v422_v33 = vmul.f32 0.5, %v421_v30  ;;  %v540_v30 = vperm.slane %v1287_v26, 0 }
  0xab   : > { %v423_v34 = vsub.f32 1.5, %v422_v33 }
  0xad   : > { %v424_v37 = vmul.f32 %v973_v27, %v423_v34 }
  0xaf   : > { %v428_v39 = vsel %vm427_vm4, %v973_v27, %v424_v37  ;;  %v554_v27 = vperm.slane %v1282_v25, 0 }
  0xb0   : > { %v430_v42 = vmul.f32 %v429_v38, %v428_v39  ;;  %v431_v43 = vmul.f32 %v428_v39, %v375_v3  ;;  %v432_v44 = vmul.f32 %v428_v39, %v376_v4  ;;  %v1245_v3 = vand.u32 127, %v478_v2  ;;  %v1250_v4 = vld [vmem:[%s1510_s2 + $0x10] sm:$0x3]  ;;  %v1310_v38 = vld [vmem:[%s1510_s2 + $0x6] sm:$0x3] }
  0xb1   : > { %v582_v5 = vperm.slane %v1250_v4, 0  ;;  %v583_v6 = vperm.slane %v1250_v4, 1 }
  0xb2   : > { %v433_v46 = vadd.f32 %v431_v43, %v430_v42  ;;  %v434_v47 = vadd.f32 %v432_v44, %v430_v42  ;;  %vm578_vm9 = vcmp.lt.s32.totalorder %v1245_v3, 111  ;;  %vm564_vm10 = vcmp.lt.s32.totalorder %v1245_v3, 112 }
  0xb3   : > { %vm536_vm11 = vcmp.lt.s32.totalorder %v1245_v3, 127  ;;  %vm550_vm12 = vcmp.lt.s32.totalorder %v1245_v3, 113  ;;  %vm522_vm13 = vcmp.lt.s32.totalorder %v1245_v3, 1  ;;  %v526_v44 = vperm.slane %v1310_v38, 0 }
  0xb4   : > { %v464_v51 = vmul.f32 %v450_v49, %v433_v46  ;;  %v465_v52 = vmul.f32 %v451_v50, %v434_v47  ;;  %v527_v46 = vperm.slane %v1310_v38, 1  ;;  %vm494_vm14 = vcmp.lt.s32.totalorder %v1245_v3, 16 }
  0xb5   : > { %vm508_vm15 = vcmp.lt.s32.totalorder %v1245_v3, 15  ;;  %vm480_vm0 = vcmp.lt.s32.totalorder %v1245_v3, 17 }
  0xb6   : > { %v466_v55 = vadd.f32 %v464_v51, %v462_v53  ;;  %v467_v56 = vadd.f32 %v465_v52, %v463_v54  ;;  %v1332_v52 = vld [vmem:[%s1510_s2 + $0x4] sm:$0x3]  ;;  %v1337_v53 = vld [vmem:[%s1510_s2 + $0x2] sm:$0x3] }
  0xb8   : > { %vm468_vm7 = vcmp.gt.f32.partialorder %v466_v55, 0.0  ;;  %vm469_vm8 = vcmp.gt.f32.partialorder %v467_v56, 0.0  ;;  %v470_v57 = vmul.f32 0.2, %v466_v55  ;;  %v471_v58 = vmul.f32 0.2, %v467_v56 }
  0xba   : > { %v1197_v59 = vsel %vm468_vm7, %v466_v55, %v470_v57  ;;  %v1199_v60 = vsel %vm469_vm8, %v467_v56, %v471_v58  ;;  %v512_v56 = vperm.slane %v1332_v52, 0  ;;  %v513_v57 = vperm.slane %v1332_v52, 1 }
  0xbb   : > { %576 = vrot.lane.b32.xlu1 %v1199_v60, %s1042_s29  ;;  %560 = vrot.lane.b32.xlu2 %v1197_v59, %s1043_s12 }
  0xbc   : > { %574 = vrot.lane.b32.xlu0 %v1197_v59, %s1042_s29 }
  0xc3   : > { %562 = vrot.lane.b32.xlu1 %v1199_v60, %s1043_s12  ;;  %546 = vrot.lane.b32.xlu2 %v1197_v59, %s1519_s18 }
  0xc4   : > { %534 = vrot.lane.b32.xlu0 %v1199_v60, %s1523_s20 }
  0xcb   : > { %548 = vrot.lane.b32.xlu1 %v1199_v60, %s1519_s18  ;;  %532 = vrot.lane.b32.xlu2 %v1197_v59, %s1523_s20  ;;  %s1535_s18 = smov 1   ;;  %s1536_s20 = smov 127  }
  0xcc   : > { %504 = vrot.lane.b32.xlu0 %v1197_v59, %s1521_s21 }
  0xd3   : > { %518 = vrot.lane.b32.xlu1 %v1197_v59, %s1527_s25  ;;  %520 = vrot.lane.b32.xlu2 %v1199_v60, %s1527_s25  ;;  %s1538_s25 = smov 113  }
  0xd4   : > { %492 = vrot.lane.b32.xlu0 %v1199_v60, %s1525_s26 }
  0xdb   : > { %506 = vrot.lane.b32.xlu1 %v1199_v60, %s1521_s21  ;;  %490 = vrot.lane.b32.xlu2 %v1197_v59, %s1525_s26  ;;  %s1537_s21 = smov 16   ;;  %s1539_s26 = smov 15  }
  0xe3   : > { %474 = vrot.lane.b32.xlu1 %v1197_v59, %s1049_s27  ;;  %476 = vrot.lane.b32.xlu2 %v1199_v60, %s1049_s27 }
  0xeb   : > { %664 = vperm.xlu2 %968, %v394_v61  }
  0xf3   : > { %669 = vperm.xlu2 %968, %v395_v62  }
  0xfb   : > { %676 = vperm.xlu2 %968, %v396_v63  }
 0x103   : > { %681 = vperm.xlu2 %968, %v397_v0  }
 0x115   : > { %v561_v1 = vpop.permute.xlu2 %560 }
 0x11d   : > { %v547_v7 = vpop.permute.xlu2 %546 }
 0x125   : > { %v533_v21 = vpop.permute.xlu2 %532 }
 0x12d   : > { %v577_v8 = vpop.permute.xlu1 %576  ;;  %v521_v39 = vpop.permute.xlu2 %520 }
 0x12e   : > { %v575_v9 = vpop.permute.xlu0 %574 }
 0x12f   : > { %v579_v10 = vsel %vm578_vm9, %v575_v9, %v577_v8  ;;  %v580_v11 = vsel %vm578_vm9, %v577_v8, %v575_v9 }
 0x130   : > { %v586_v12 = vmul.f32 %v582_v5, %v579_v10  ;;  %v587_v13 = vmul.f32 %v583_v6, %v580_v11 }
 0x132   : > { %599 = vmatpush.msra.mxu0 %v586_v12  ;;  %619 = vmatpush.msra.mxu1 %v587_v13 }
 0x135   : > { %v563_v17 = vpop.permute.xlu1 %562  ;;  %v491_v54 = vpop.permute.xlu2 %490 }
 0x136   : > { %v565_v19 = vsel %vm564_vm10, %v561_v1, %v563_v17  ;;  %v566_v20 = vsel %vm564_vm10, %v563_v17, %v561_v1  ;;  %v535_v22 = vpop.permute.xlu0 %534 }
 0x137   : > { %v572_v23 = vmul.f32 %v568_v15, %v565_v19  ;;  %v573_v24 = vmul.f32 %v569_v16, %v566_v20  ;;  %v537_v32 = vsel %vm536_vm11, %v533_v21, %v535_v22  ;;  %v538_v33 = vsel %vm536_vm11, %v535_v22, %v533_v21  ;;  %v387_v22 = vld [vmem:[%s1515_s7] sm:$0xff] }
 0x138   : > { %v544_v42 = vmul.f32 %v540_v30, %v537_v32  ;;  %v545_v43 = vmul.f32 %v541_v31, %v538_v33 }
 0x139   : > { %600 = vmatpush.msra.mxu0 %v572_v23  ;;  %620 = vmatpush.msra.mxu1 %v573_v24 }
 0x13d   : > { %v549_v29 = vpop.permute.xlu1 %548  ;;  %v477_v12 = vpop.permute.xlu2 %476 }
 0x13e   : > { %v551_v34 = vsel %vm550_vm12, %v547_v7, %v549_v29  ;;  %v552_v35 = vsel %vm550_vm12, %v549_v29, %v547_v7  ;;  %v505_v41 = vpop.permute.xlu0 %504  ;;  %v1360_v7 = vld [vmem:[%s1510_s2] sm:$0x3] }
 0x13f   : > { %v558_v36 = vmul.f32 %v554_v27, %v551_v34  ;;  %v559_v37 = vmul.f32 %v555_v28, %v552_v35  ;;  %v484_v10 = vperm.slane %v1360_v7, 0  ;;  %v485_v11 = vperm.slane %v1360_v7, 1 }
 0x141   : > { %601 = vmatpush.msra.mxu0 %v558_v36  ;;  %621 = vmatpush.msra.mxu1 %v559_v37 }
 0x143   : > { %602 = vmatpush.msra.mxu0 %v544_v42  ;;  %622 = vmatpush.msra.mxu1 %v545_v43 }
 0x145   : > { %v519_v47 = vpop.permute.xlu1 %518  ;;  %603 = vmatpush.msra.mxu0 %v1197_v59  ;;  %623 = vmatpush.msra.mxu1 %v1199_v60  ;;  %v498_v59 = vperm.slane %v1337_v53, 0  ;;  %v499_v60 = vperm.slane %v1337_v53, 1  ;;  %v665_v36 = vpop.permute.xlu2 %664  ;;  %v388_v53 = vld [vmem:[%s1516_s8] sm:$0xff] }
 0x146   : > { %v523_v48 = vsel %vm522_vm13, %v519_v47, %v521_v39  ;;  %v524_v49 = vsel %vm522_vm13, %v521_v39, %v519_v47  ;;  %v493_v55 = vpop.permute.xlu0 %492 }
 0x147   : > { %v530_v50 = vmul.f32 %v526_v44, %v524_v49  ;;  %v531_v51 = vmul.f32 %v527_v46, %v523_v48  ;;  %v495_v61 = vsel %vm494_vm14, %v491_v54, %v493_v55  ;;  %v496_v62 = vsel %vm494_vm14, %v493_v55, %v491_v54 }
 0x148   : > { %v502_v8 = vmul.f32 %v498_v59, %v496_v62  ;;  %v503_v9 = vmul.f32 %v499_v60, %v495_v61 }
 0x149   : > { %604 = vmatpush.msra.mxu0 %v530_v50  ;;  %624 = vmatpush.msra.mxu1 %v531_v51 }
 0x14d   : > { %v507_v58 = vpop.permute.xlu1 %506  ;;  %v670_v49 = vpop.permute.xlu2 %669 }
 0x14e   : > { %v509_v63 = vsel %vm508_vm15, %v505_v41, %v507_v58  ;;  %v510_v0 = vsel %vm508_vm15, %v507_v58, %v505_v41 }
 0x14f   : > { %v516_v1 = vmul.f32 %v512_v56, %v510_v0  ;;  %v517_v2 = vmul.f32 %v513_v57, %v509_v63 }
 0x151   : > { %605 = vmatpush.msra.mxu0 %v516_v1  ;;  %625 = vmatpush.msra.mxu1 %v517_v2 }
 0x153   : > { %606 = vmatpush.msra.mxu0 %v502_v8  ;;  %626 = vmatpush.msra.mxu1 %v503_v9 }
 0x155   : > { %v475_v13 = vpop.permute.xlu1 %474  ;;  %v677_v55 = vpop.permute.xlu2 %676 }
 0x156   : > { %v481_v17 = vsel %vm480_vm0, %v475_v13, %v477_v12  ;;  %v482_v19 = vsel %vm480_vm0, %v477_v12, %v475_v13  ;;  %v672_v13 = vsel %vm1181_vm5, %v665_v36, %v670_v49 }
 0x157   : > { %v488_v20 = vmul.f32 %v484_v10, %v482_v19  ;;  %v489_v21 = vmul.f32 %v485_v11, %v481_v17  ;;  %v673_v17 = vsel %vm1185_vm6, %v665_v36, %v670_v49 }
 0x159   : > { %607 = vmatpush.msra.mxu0 %v488_v20  ;;  %627 = vmatpush.msra.mxu1 %v489_v21 }
 0x15a   : > { %907 = vmatmul.msk.f32.vlgmr.msra.gmra.mxu0 %vm588_vm1, %v387_v22  ;;  %908 = vmatmul.msk.f32.vlgmr.msra.gmra.mxu1 %vm588_vm1, %v387_v22 }
 0x15d   : > { %v682_v8 = vpop.permute.xlu2 %681 }
 0x15e   : > { %v684_v21 = vsel %vm1181_vm5, %v677_v55, %v682_v8  ;;  %v685_v22 = vsel %vm1185_vm6, %v677_v55, %v682_v8  ;;  %vm765_vm5 = vcmask 654336  }
 0x1d7   : > { %v609_v23 = vpop.f32.mrf.mxu0  ;;  %v629_v24 = vpop.f32.mrf.mxu1 }
 0x1d8   : > { %v636_v29 = vmul.f32 %v609_v23, %v609_v23  ;;  %v637_v32 = vmul.f32 %v629_v24, %v629_v24  ;;  %v632_v33 = vadd.f32 %v629_v24, %v609_v23 }
 0x1da   : > { %633 = vadd.xlane.f32.xlu0 %v632_v33  ;;  %v638_v34 = vadd.f32 %v637_v32, %v636_v29 }
 0x1dc   : > { %639 = vadd.xlane.f32.xlu1 %v638_v34 }
 0x24d   : > { %v634_v35 = vpop.xlane.xlu0 %633 }
 0x24e   : > { %v635_v37 = vmul.f32 %v634_v35, %v1173_v18 }
 0x24f   : > { %v640_v39 = vpop.xlane.xlu1 %639 }
 0x250   : > { %v642_v41 = vmul.f32 %v635_v37, %v635_v37  ;;  %v641_v42 = vmul.f32 %v640_v39, %v1173_v18  ;;  %v656_v63 = vsub.f32 0.0, %v635_v37 }
 0x252   : > { %v643_v43 = vsub.f32 %v641_v42, %v642_v41 }
 0x254   : > { %v644_v47 = vmax.f32 %v643_v43, 0.0 }
 0x256   : > { %v645_v48 = vadd.f32 1e-05, %v644_v47 }
 0x258   : > { %974 = vrsqrt.f32 %v645_v48  ;;  %vm652_vm3 = vweird.f32 %v645_v48 }
 0x25e   : > { %v975_v50 = vpop.eup %974 }
 0x25f   : > { %v647_v51 = vmul.f32 %v975_v50, %v645_v48  ;;  %vm653_vm2 = vweird.f32 %v975_v50 }
 0x260   : > { %vm654_vm4 = vmor %vm652_vm3, %vm653_vm2 }
 0x261   : > { %v648_v54 = vmul.f32 %v975_v50, %v647_v51 }
 0x263   : > { %v649_v58 = vmul.f32 0.5, %v648_v54 }
 0x265   : > { %v650_v61 = vsub.f32 1.5, %v649_v58 }
 0x267   : > { %v651_v62 = vmul.f32 %v975_v50, %v650_v61 }
 0x269   : > { %v655_v0 = vsel %vm654_vm4, %v975_v50, %v651_v62 }
 0x26a   : > { %v657_v1 = vmul.f32 %v656_v63, %v655_v0  ;;  %v658_v2 = vmul.f32 %v655_v0, %v609_v23  ;;  %v659_v18 = vmul.f32 %v655_v0, %v629_v24 }
 0x26c   : > { %v660_v9 = vadd.f32 %v658_v2, %v657_v1  ;;  %v661_v12 = vadd.f32 %v659_v18, %v657_v1 }
 0x26e   : > { %v686_v19 = vmul.f32 %v672_v13, %v660_v9  ;;  %v687_v20 = vmul.f32 %v673_v17, %v661_v12 }
 0x270   : > { %v688_v29 = vadd.f32 %v686_v19, %v684_v21  ;;  %v689_v23 = vadd.f32 %v687_v20, %v685_v22 }
 0x272   : > { %v692_v24 = vmul.f32 0.2, %v688_v29  ;;  %v693_v32 = vmul.f32 0.2, %v689_v23  ;;  %vm691_vm7 = vcmp.gt.f32.partialorder %v689_v23, 0.0  ;;  %vm690_vm8 = vcmp.gt.f32.partialorder %v688_v29, 0.0 }
 0x274   : > { %v695_v33 = vsel %vm691_vm7, %v689_v23, %v693_v32  ;;  %v694_v34 = vsel %vm690_vm8, %v688_v29, %v692_v24 }
 0x275   : > { %746 = vrot.lane.b32.xlu1 %v695_v33, %s1043_s12  ;;  %754 = vrot.lane.b32.xlu0 %v695_v33, %s1042_s29 }
 0x276   : > { %752 = vrot.lane.b32.xlu2 %v694_v34, %s1042_s29 }
 0x27d   : > { %722 = vrot.lane.b32.xlu1 %v695_v33, %s1535_s18  ;;  %728 = vrot.lane.b32.xlu0 %v694_v34, %s1536_s20 }
 0x27e   : > { %744 = vrot.lane.b32.xlu2 %v694_v34, %s1043_s12 }
 0x285   : > { %704 = vrot.lane.b32.xlu1 %v694_v34, %s1537_s21  ;;  %720 = vrot.lane.b32.xlu0 %v694_v34, %s1535_s18  ;;  %s917_s18 = sshll.u32 %s1126_s17, 4 }
 0x286   : > { %736 = vrot.lane.b32.xlu2 %v694_v34, %s1538_s25 }
 0x28d   : > { %698 = vrot.lane.b32.xlu1 %v695_v33, %s1049_s27  ;;  %714 = vrot.lane.b32.xlu0 %v695_v33, %s1539_s26 }
 0x28e   : > { %738 = vrot.lane.b32.xlu2 %v695_v33, %s1538_s25  ;;  %s823_s25 = scalar_lea.hbm %s1518_s10, %s917_s18 }
 0x28f   : > { %s827_s12 = sshll.u32 %s823_s25, 4  ;;  %s828_s12 = int_to_ptr.hbm [resolvable:$true] %s827_s12 }
 0x290   : > { %s990_s11 = sshra.s32 %s828_s12, 4  ;;  %s991_s11 = int_to_ptr.hbm [resolvable:$true] %s990_s11 }
 0x291   : > { %s992_s17 = scalar_lea.hbm %s991_s11, 16  ;;  %p997_p0 = scmp.lt.s32.totalorder %s991_s11, %s1518_s10 }
 0x292   : > { %p993_p11 = scmp.ne.s32.totalorder %s991_s11, %s992_s17 }
 0x294   : > { %p994_p12 = pnand %p993_p11, %p1143_p5 }
 0x295   : > { %696 = vrot.lane.b32.xlu0 %v694_v34, %s1049_s27  ;;  %s812_s27 = scalar_lea.sflag [#allocation3], %s363_s28 }
 0x296   : > { %730 = vrot.lane.b32.xlu2 %v695_v33, %s1536_s20  ;;  %p995_p13 = pneg %p994_p12  ;;  %s996_s20 = scalar_lea.hbm %s1518_s10, 32 }
 0x297   : > { %p998_p1 = scmp.lt.s32.totalorder %s996_s20, %s992_s17 }
 0x299   : > { %p999_p2 = por %p998_p1, %p997_p0 }
 0x29b   : > { %p1000_p3 = pnand %p999_p2, %p995_p13 }
 0x29e   : > { %712 = vrot.lane.b32.xlu2 %v694_v34, %s1539_s26  ;;  %s365_s26 = scalar_lea.vmem [#allocation2], %s903_s30 }
 0x29f   : > { %s825_s29 = sshll.u32 %s365_s26, 4  ;;  %s826_s29 = int_to_ptr.vmem [resolvable:$true] %s825_s29 }
 0x2a6   : > { %706 = vrot.lane.b32.xlu2 %v695_v33, %s1537_s21 }
 0x2ae   : > { %762 = vperm.xlu2 %968, %v389_v40  }
 0x2d0   : > { %v753_v45 = vpop.permute.xlu2 %752 }
 0x2d8   : > { %v745_v35 = vpop.permute.xlu2 %744 }
 0x2e0   : > { %v737_v36 = vpop.permute.xlu2 %736 }
 0x2e7   : > { %v747_v37 = vpop.permute.xlu1 %746  ;;  %v755_v39 = vpop.permute.xlu0 %754 }
 0x2e8   : > { %v748_v41 = vsel %vm564_vm10, %v745_v35, %v747_v37  ;;  %v749_v42 = vsel %vm564_vm10, %v747_v37, %v745_v35  ;;  %v756_v43 = vsel %vm578_vm9, %v753_v45, %v755_v39  ;;  %v757_v47 = vsel %vm578_vm9, %v755_v39, %v753_v45  ;;  %v739_v48 = vpop.permute.xlu2 %738 }
 0x2e9   : > { %v758_v49 = vmul.f32 %v756_v43, %v582_v5  ;;  %v759_v50 = vmul.f32 %v757_v47, %v583_v6  ;;  %v740_v51 = vsel %vm550_vm12, %v737_v36, %v739_v48  ;;  %v741_v54 = vsel %vm550_vm12, %v739_v48, %v737_v36 }
 0x2ea   : > { %v750_v55 = vmul.f32 %v748_v41, %v568_v15  ;;  %v751_v58 = vmul.f32 %v749_v42, %v569_v16  ;;  %v742_v4 = vmul.f32 %v740_v51, %v554_v27  ;;  %v743_v5 = vmul.f32 %v741_v54, %v555_v28 }
 0x2eb   : > { %776 = vmatpush.msra.mxu2 %v758_v49  ;;  %796 = vmatpush.msra.mxu3 %v759_v50 }
 0x2ed   : > { %777 = vmatpush.msra.mxu2 %v750_v55  ;;  %797 = vmatpush.msra.mxu3 %v751_v58 }
 0x2ef   : > { %v729_v6 = vpop.permute.xlu0 %728  ;;  %778 = vmatpush.msra.mxu2 %v742_v4  ;;  %798 = vmatpush.msra.mxu3 %v743_v5  ;;  %v723_v27 = vpop.permute.xlu1 %722 }
 0x2f0   : > { %v731_v61 = vpop.permute.xlu2 %730 }
 0x2f1   : > { %v732_v62 = vsel %vm536_vm11, %v729_v6, %v731_v61  ;;  %v733_v15 = vsel %vm536_vm11, %v731_v61, %v729_v6 }
 0x2f2   : > { %v734_v14 = vmul.f32 %v732_v62, %v540_v30  ;;  %v735_v16 = vmul.f32 %v733_v15, %v541_v31 }
 0x2f4   : > { %779 = vmatpush.msra.mxu2 %v734_v14  ;;  %799 = vmatpush.msra.mxu3 %v735_v16 }
 0x2f6   : > { %780 = vmatpush.msra.mxu2 %v694_v34  ;;  %800 = vmatpush.msra.mxu3 %v695_v33 }
 0x2f7   : > { %v721_v25 = vpop.permute.xlu0 %720  ;;  %v705_v30 = vpop.permute.xlu1 %704 }
 0x2f8   : > { %v724_v28 = vsel %vm522_vm13, %v721_v25, %v723_v27  ;;  %v725_v63 = vsel %vm522_vm13, %v723_v27, %v721_v25  ;;  %v713_v0 = vpop.permute.xlu2 %712 }
 0x2f9   : > { %v726_v1 = vmul.f32 %v725_v63, %v526_v44  ;;  %v727_v26 = vmul.f32 %v724_v28, %v527_v46 }
 0x2fb   : > { %781 = vmatpush.msra.mxu2 %v726_v1  ;;  %801 = vmatpush.msra.mxu3 %v727_v26 }
 0x2ff   : > { %v715_v31 = vpop.permute.xlu0 %714  ;;  %v699_v17 = vpop.permute.xlu1 %698 }
 0x300   : > { %v716_v2 = vsel %vm508_vm15, %v713_v0, %v715_v31  ;;  %v717_v18 = vsel %vm508_vm15, %v715_v31, %v713_v0  ;;  %v707_v8 = vpop.permute.xlu2 %706 }
 0x301   : > { %v708_v9 = vsel %vm494_vm14, %v705_v30, %v707_v8  ;;  %v709_v44 = vsel %vm494_vm14, %v707_v8, %v705_v30  ;;  %v718_v38 = vmul.f32 %v717_v18, %v512_v56  ;;  %v719_v46 = vmul.f32 %v716_v2, %v513_v57 }
 0x302   : > { %v710_v12 = vmul.f32 %v709_v44, %v498_v59  ;;  %v711_v13 = vmul.f32 %v708_v9, %v499_v60 }
 0x303   : > { %782 = vmatpush.msra.mxu2 %v718_v38  ;;  %802 = vmatpush.msra.mxu3 %v719_v46 }
 0x305   : > { %783 = vmatpush.msra.mxu2 %v710_v12  ;;  %803 = vmatpush.msra.mxu3 %v711_v13 }
 0x307   : > { %v697_v19 = vpop.permute.xlu0 %696 }
 0x308   : > { %v700_v56 = vsel %vm480_vm0, %v697_v19, %v699_v17  ;;  %v701_v52 = vsel %vm480_vm0, %v699_v17, %v697_v19  ;;  %v763_v3 = vpop.permute.xlu2 %762 }
 0x309   : > { %v702_v57 = vmul.f32 %v701_v52, %v484_v10  ;;  %v703_v59 = vmul.f32 %v700_v56, %v485_v11 }
 0x30b   : > { %784 = vmatpush.msra.mxu2 %v702_v57  ;;  %804 = vmatpush.msra.mxu3 %v703_v59 }
 0x30c   : > { %909 = vmatmul.msk.f32.vlgmr.msra.gmra.mxu2 %vm765_vm5, %v388_v53  ;;  %910 = vmatmul.msk.f32.vlgmr.msra.gmra.mxu3 %vm765_vm5, %v388_v53 }
 0x38f   : > { %v786_v60 = vpop.f32.mrf.mxu2  ;;  %v806_v7 = vpop.f32.mrf.mxu3 }
 0x390   : > { %v787_v10 = vadd.f32 %v786_v60, %v763_v3  ;;  %v807_v11 = vadd.f32 %v806_v7, %v763_v3 }
 0x392   : > { %809 = vst [vmem:[%s365_s26] sm:$0xff] %v787_v10 }
 0x393   : > { %810 = vst [vmem:[%s365_s26 + $0x8] sm:$0xff] %v807_v11 }
 0x394   : > { %1003 = shalt.err (!%p1000_p3)
}
 0x395   : > { %918 = dma.vmem_to_hbm [thread:$0]  (%p1143_p5), %s826_s29, 256, %s828_s12, %s812_s27  }
 0x396 PF: > { %p924_p4 = scmp.ge.s32.totalorder %s1038_s16, 2  ;;  %s839_s28 = sand.u32 1, %s1026_s13  }
 0x397   : > { %s840_s26 = scalar_lea.sflag [#allocation3], %s839_s28 }
 0x398   : > { %p921_p7 = pnand %p924_p4, %p1147_p6 }
 0x39a   : > { %p922_p8 = pneg %p921_p7 }
 0x39c   : > { %1021 = dma.done.wait (%p922_p8), %s840_s26, 256  }
 0x39d   : > { %1023 = vsyncadd (%p922_p8), %s840_s26, 4294967040  ;;  %p20_p9 = scmp.ge.s32.totalorder %s1130_s19, 4   ;;  %s1540_s13 = smov %s1030_s14 }
 0x39e   : > { %s1541_s14 = smov %s1034_s15  ;;  %s1542_s15 = smov %s1141_s22 }
 0x39f   : > { %s1543_s16 = smov %s1130_s19  ;;  %22 = sbr.rel (!%p20_p9) target bundleno = 3 (0x3), region = 98 }
 0x3a4   :  { %846 = vsyncpa [#allocation3], 1 }
 0x3a5   :  { %848 = vsyncpa [#allocation3 + $0x1], 1 }

</bundles_post_ra>
